<compile_context>
chip_gen: v5e
topology: v5e:2x2
jax: 0.10.0
libtpu: 0.0.40
codegen_flags: <defaults>
</compile_context>

<pallas_src>
import functools

import jax
import jax.numpy as jnp
from jax.experimental import pallas as pl
from jax.experimental.pallas import tpu as pltpu


def _round_up(x, mult):
    return ((x + mult - 1) // mult) * mult


def _fused_mm_add_mm_kernel(inp_rows_ref, inp_cols_ref, x1_ref, x2_ref,
                            out_ref, acc_ref, *, use_bf16_mxu):
    # Grid = (row_tiles i, t1-column tiles j).  j is the reduction axis of
    # the SECOND matmul; the (tm, m_pad) output accumulator lives in VMEM
    # scratch across j.
    j = pl.program_id(1)

    @pl.when(j == 0)
    def _init():
        acc_ref[...] = jnp.zeros_like(acc_ref)

    lhs = inp_rows_ref[...]
    rhs = inp_cols_ref[...]
    x2s = x2_ref[...]
    if use_bf16_mxu:
        lhs = lhs.astype(jnp.bfloat16)
        rhs = rhs.astype(jnp.bfloat16)
        x2s = x2s.astype(jnp.bfloat16)

    # (tm, tj) block of t1 = inp @ inp, f32 accumulation on the MXU.
    t1 = jnp.dot(lhs, rhs, preferred_element_type=jnp.float32)
    # Fold in the matching x1 block (single (tm, tj) VPU pass, no big temp).
    v1 = t1 + x1_ref[...].astype(jnp.float32)
    if use_bf16_mxu:
        v1 = v1.astype(jnp.bfloat16)

    # Second matmul, accumulated over j: acc(tm, m_pad) += v1 @ x2_stripe.
    acc_ref[...] += jnp.dot(v1, x2s, preferred_element_type=jnp.float32)

    @pl.when(j == pl.num_programs(1) - 1)
    def _finalize():
        out_ref[...] = acc_ref[...].astype(out_ref.dtype)


def _vmem_bytes(tm, tj, n_pad, m_pad, elt):
    return (2 * tm * n_pad * elt      # inp row block (LHS), double-buffered
            + 2 * n_pad * tj * elt    # inp column stripe (RHS of first mm)
            + 2 * tm * tj * elt       # x1 block
            + 2 * tj * m_pad * elt    # x2 stripe
            + 2 * tm * m_pad * elt    # output tile
            + tm * m_pad * 4)         # f32 output accumulator scratch


def _vmem_budget_bytes():
    # Per-chip limit with headroom for Mosaic internal scratch
    # (v5e/v6e: 128 MiB physical -> ~102 MiB budget; v7x: 64 MiB -> ~51 MiB).
    try:
        cap = int(pltpu.get_tpu_info().vmem_capacity_bytes)
    except Exception:
        cap = 64 * 1024 * 1024
    return int(cap * 0.8)


def _select_tiles(n_pad, m_pad, elt, budget):
    opts = [t for t in (512, 256, 128) if t <= n_pad and n_pad % t == 0]
    # Prefer >= 2 row tiles so the "parallel" row axis can shard across the
    # two TensorCores of v7x (negligible MXU-efficiency cost elsewhere).
    tm_opts = [t for t in opts if n_pad // t >= 2] or opts
    for tm in tm_opts:          # largest tm first: fewest column-stripe restreams
        for tj in opts:
            if _vmem_bytes(tm, tj, n_pad, m_pad, elt) <= budget:
                return tm, tj
    # TODO(synk): also tile the output column axis (m_pad) for very large m.
    return tm_opts[-1], opts[-1]


def fused_mm_add_mm(inp, x1, x2, *, force_pallas=False, use_bf16_mxu=False):
    n, n2 = inp.shape
    assert n == n2, "inp must be square for torch.mm(inp, inp)"
    assert x1.shape == (n, n)
    assert x2.shape[0] == n
    m = x2.shape[1]
    out_dtype = jnp.result_type(inp.dtype, x1.dtype, x2.dtype)

    n_pad = _round_up(n, 128)
    m_pad = _round_up(m, 128)

    # Tiny-shape fast path: padding to (128,128) inflates FLOPs by orders of
    # magnitude and the fixed pallas_call launch/DMA overhead dominates, so
    # plain XLA fusion is strictly faster there.
    if not force_pallas and n_pad <= 128 and m_pad <= 128:
        return ((inp @ inp + x1) @ x2).astype(out_dtype)

    elt = jnp.dtype(inp.dtype).itemsize

    # Zero padding is exact for this matmul/add/matmul chain.
    inp_p = jnp.pad(inp, ((0, n_pad - n), (0, n_pad - n)))
    x1_p = jnp.pad(x1, ((0, n_pad - n), (0, n_pad - n)))
    x2_p = jnp.pad(x2, ((0, n_pad - n), (0, m_pad - m)))

    budget = _vmem_budget_bytes()
    tm, tj = _select_tiles(n_pad, m_pad, elt, budget)
    grid = (n_pad // tm, n_pad // tj)

    vmem_needed = _vmem_bytes(tm, tj, n_pad, m_pad, elt)
    vmem_limit = int(min(budget, max(int(1.5 * vmem_needed), 32 * 1024 * 1024)))
    vmem_limit = max(vmem_limit, vmem_needed)   # never below what we need

    row_tiles = n_pad // tm
    flops = 2 * n_pad ** 3 + n_pad ** 2 + 2 * n_pad ** 2 * m_pad
    bytes_accessed = elt * (
        n_pad * n_pad                      # inp as LHS (resident per row tile)
        + row_tiles * n_pad * n_pad        # inp column stripes, restreamed per row tile
        + n_pad * n_pad                    # x1 (read once)
        + row_tiles * n_pad * m_pad        # x2 stripes, restreamed per row tile
        + n_pad * m_pad)                   # output

    kernel = functools.partial(_fused_mm_add_mm_kernel,
                               use_bf16_mxu=use_bf16_mxu)

    out_p = pl.pallas_call(
        kernel,
        out_shape=jax.ShapeDtypeStruct((n_pad, m_pad), out_dtype),
        grid_spec=pltpu.PrefetchScalarGridSpec(
            num_scalar_prefetch=0,
            grid=grid,
            in_specs=[
                pl.BlockSpec((tm, n_pad), lambda i, j: (i, 0)),   # inp rows (LHS)
                pl.BlockSpec((n_pad, tj), lambda i, j: (0, j)),   # inp column stripe
                pl.BlockSpec((tm, tj), lambda i, j: (i, j)),      # x1 block
                pl.BlockSpec((tj, m_pad), lambda i, j: (j, 0)),   # x2 stripe
            ],
            out_specs=pl.BlockSpec((tm, m_pad), lambda i, j: (i, 0)),
            scratch_shapes=[pltpu.VMEM((tm, m_pad), jnp.float32)],
        ),
        compiler_params=pltpu.CompilerParams(
            dimension_semantics=("parallel", "arbitrary"),
            vmem_limit_bytes=vmem_limit,
        ),
        cost_estimate=pl.CostEstimate(
            flops=flops, transcendentals=0, bytes_accessed=bytes_accessed),
    )(inp_p, inp_p, x1_p, x2_p)

    return out_p[:n, :m]


if __name__ == "__main__":
    key = jax.random.PRNGKey(0)

    # 1) Tiny shape consistent with the module semantics (inp square, x1 (n,n),
    #    x2 (n,m)); force the Pallas path so the kernel itself is exercised.
    n, m = 8, 4
    k_inp, k_x1, k_x2 = jax.random.split(key, 3)
    inp = jax.random.normal(k_inp, (n, n), dtype=jnp.float32)
    x1 = jax.random.normal(k_x1, (n, n), dtype=jnp.float32)
    x2 = jax.random.normal(k_x2, (n, m), dtype=jnp.float32)

    out = fused_mm_add_mm(inp, x1, x2, force_pallas=True)
    jax.block_until_ready(out)
    ref = (inp @ inp + x1) @ x2
    assert out.shape == (n, m)
    assert jnp.allclose(out, ref, atol=1e-4, rtol=1e-4), "tiny-case mismatch"

    # 2) Moderate multi-tile shape (non-128-multiple m) exercising the tiled
    #    grid, padding, and streamed x2 stripes via the default path.
    n2, m2 = 384, 160
    ka, kb, kc = jax.random.split(jax.random.PRNGKey(0), 3)
    inp2 = jax.random.normal(ka, (n2, n2), dtype=jnp.float32)
    x1b = jax.random.normal(kb, (n2, n2), dtype=jnp.float32)
    x2b = jax.random.normal(kc, (n2, m2), dtype=jnp.float32)

    out2 = fused_mm_add_mm(inp2, x1b, x2b)
    jax.block_until_ready(out2)
    ref2 = (inp2 @ inp2 + x1b) @ x2b
    assert out2.shape == (n2, m2)
    rel_err = jnp.max(jnp.abs(out2 - ref2)) / (jnp.max(jnp.abs(ref2)) + 1e-6)
    assert rel_err < 1e-2, f"multi-tile mismatch, rel_err={rel_err}"

    print("KERNEL_OK")
</pallas_src>

<mosaic_0001>
module attributes {stable_mosaic.version = 11 : i64} {
  func.func @_fused_mm_add_mm_kernel(%arg0: i32, %arg1: i32, %arg2: memref<128x128xf32, #tpu.memory_space<vmem>>, %arg3: memref<128x128xf32, #tpu.memory_space<vmem>>, %arg4: memref<128x128xf32, #tpu.memory_space<vmem>>, %arg5: memref<128x128xf32, #tpu.memory_space<vmem>>, %arg6: memref<128x128xf32, #tpu.memory_space<vmem>>, %arg7: memref<128x128xf32, #tpu.memory_space<vmem>>) attributes {dimension_semantics = [#tpu.dimension_semantics<parallel>, #tpu.dimension_semantics<arbitrary>], iteration_bounds = array<i64: 1, 1>, scalar_prefetch = 0 : i64, scratch_operands = 1 : i64, tpu.core_type = #tpu.core_type<tc>, window_params = [{transform_indices = @transform_0, window_bounds = array<i64: 128, 128>}, {transform_indices = @transform_1, window_bounds = array<i64: 128, 128>}, {transform_indices = @transform_2, window_bounds = array<i64: 128, 128>}, {transform_indices = @transform_3, window_bounds = array<i64: 128, 128>}, {transform_indices = @transform_4, window_bounds = array<i64: 128, 128>}]} {
    %c0_i32 = arith.constant 0 : i32
    %0 = arith.cmpi eq, %arg1, %c0_i32 : i32
    %1 = arith.extui %0 : i1 to i32
    %c0_i32_0 = arith.constant 0 : i32
    %2 = arith.cmpi ne, %1, %c0_i32_0 : i32
    scf.if %2 {
      %cst_15 = arith.constant 0.000000e+00 : f32
      %16 = vector.broadcast %cst_15 : f32 to vector<128x128xf32>
      %c0_16 = arith.constant 0 : index
      %c0_17 = arith.constant 0 : index
      %17 = vector.load %arg7[%c0_16, %c0_17] : memref<128x128xf32, #tpu.memory_space<vmem>>, vector<128x128xf32>
      tpu.vector_store %arg7[%c0_16, %c0_17], %16 {strides = array<i32>} : memref<128x128xf32, #tpu.memory_space<vmem>>, vector<128x128xf32>,
    } else {
    }
    %c0 = arith.constant 0 : index
    %c0_1 = arith.constant 0 : index
    %3 = vector.load %arg2[%c0, %c0_1] : memref<128x128xf32, #tpu.memory_space<vmem>>, vector<128x128xf32>
    %c0_2 = arith.constant 0 : index
    %c0_3 = arith.constant 0 : index
    %4 = vector.load %arg3[%c0_2, %c0_3] : memref<128x128xf32, #tpu.memory_space<vmem>>, vector<128x128xf32>
    %c0_4 = arith.constant 0 : index
    %c0_5 = arith.constant 0 : index
    %5 = vector.load %arg5[%c0_4, %c0_5] : memref<128x128xf32, #tpu.memory_space<vmem>>, vector<128x128xf32>
    %cst = arith.constant dense<0.000000e+00> : vector<128x128xf32>
    %6 = tpu.matmul %3, %4, %cst {dimension_numbers = #tpu.dot_dimension_numbers<[1], [0], [0], [1], [0, 0, 1, 1], [], []>} : vector<128x128xf32>, vector<128x128xf32>, vector<128x128xf32> -> vector<128x128xf32>
    %c0_6 = arith.constant 0 : index
    %c0_7 = arith.constant 0 : index
    %7 = vector.load %arg4[%c0_6, %c0_7] : memref<128x128xf32, #tpu.memory_space<vmem>>, vector<128x128xf32>
    %8 = arith.addf %6, %7 : vector<128x128xf32>
    %c0_8 = arith.constant 0 : index
    %c0_9 = arith.constant 0 : index
    %9 = vector.load %arg7[%c0_8, %c0_9] : memref<128x128xf32, #tpu.memory_space<vmem>>, vector<128x128xf32>
    %cst_10 = arith.constant dense<0.000000e+00> : vector<128x128xf32>
    %10 = tpu.matmul %8, %5, %cst_10 {dimension_numbers = #tpu.dot_dimension_numbers<[1], [0], [0], [1], [0, 0, 1, 1], [], []>} : vector<128x128xf32>, vector<128x128xf32>, vector<128x128xf32> -> vector<128x128xf32>
    %11 = arith.addf %9, %10 : vector<128x128xf32>
    %c0_11 = arith.constant 0 : index
    %c0_12 = arith.constant 0 : index
    %12 = vector.load %arg7[%c0_11, %c0_12] : memref<128x128xf32, #tpu.memory_space<vmem>>, vector<128x128xf32>
    tpu.vector_store %arg7[%c0_11, %c0_12], %11 {strides = array<i32>} : memref<128x128xf32, #tpu.memory_space<vmem>>, vector<128x128xf32>,
    %c0_i32_13 = arith.constant 0 : i32
    %13 = arith.cmpi eq, %arg1, %c0_i32_13 : i32
    %14 = arith.extui %13 : i1 to i32
    %c0_i32_14 = arith.constant 0 : i32
    %15 = arith.cmpi ne, %14, %c0_i32_14 : i32
    scf.if %15 {
      %c0_15 = arith.constant 0 : index
      %c0_16 = arith.constant 0 : index
      %16 = vector.load %arg7[%c0_15, %c0_16] : memref<128x128xf32, #tpu.memory_space<vmem>>, vector<128x128xf32>
      %c0_17 = arith.constant 0 : index
      %c0_18 = arith.constant 0 : index
      %17 = vector.load %arg6[%c0_17, %c0_18] : memref<128x128xf32, #tpu.memory_space<vmem>>, vector<128x128xf32>
      tpu.vector_store %arg6[%c0_17, %c0_18], %16 {strides = array<i32>} : memref<128x128xf32, #tpu.memory_space<vmem>>, vector<128x128xf32>,
    } else {
    }
    return
  }
  func.func @transform_0(%arg0: i32, %arg1: i32) -> (i32, i32) {
    %c0_i32 = arith.constant 0 : i32
    %c0_i32_0 = arith.constant 0 : i32
    return %arg0, %c0_i32 : i32, i32
  }
  func.func @transform_1(%arg0: i32, %arg1: i32) -> (i32, i32) {
    %c0_i32 = arith.constant 0 : i32
    %c0_i32_0 = arith.constant 0 : i32
    return %c0_i32, %arg1 : i32, i32
  }
  func.func @transform_2(%arg0: i32, %arg1: i32) -> (i32, i32) {
    %c0_i32 = arith.constant 0 : i32
    return %arg0, %arg1 : i32, i32
  }
  func.func @transform_3(%arg0: i32, %arg1: i32) -> (i32, i32) {
    %c0_i32 = arith.constant 0 : i32
    %c0_i32_0 = arith.constant 0 : i32
    return %arg1, %c0_i32 : i32, i32
  }
  func.func @transform_4(%arg0: i32, %arg1: i32) -> (i32, i32) {
    %c0_i32 = arith.constant 0 : i32
    %c0_i32_0 = arith.constant 0 : i32
    return %arg0, %c0_i32 : i32, i32
  }
}

</mosaic_0001>

<bundles_post_ra>
// kernel: tpu_custom_call.1
= control target key start
LH: loop header
LB: loop body
LE: loop exit
PB: predicated region body
PF: predicated region fallthrough
CT: control target
= control target key end

     0   :  { %9 = vsyncpa [#allocation4], 0  ;;  %s628_s0 = inlined_call_operand.hbm [shape: f32[128,128], index: 0, kind: input, shape index: {}]   ;;  %s629_s1 = inlined_call_operand.hbm [shape: f32[128,128], index: 1, kind: input, shape index: {}]   ;;  %s630_s2 = inlined_call_operand.hbm [shape: f32[128,128], index: 2, kind: input, shape index: {}]   ;;  %s631_s3 = inlined_call_operand.hbm [shape: f32[128,128], index: 3, kind: input, shape index: {}]   ;;  %s632_s4 = inlined_call_operand.hbm [shape: f32[128,128], index: 4, kind: output, shape index: {}]  }
   0x1   :  { %10 = vsyncpa [#allocation7], 0 }
   0x2   :  { %11 = vsyncpa [#allocation10], 0 }
   0x3   :  { %12 = vsyncpa [#allocation5], 0  ;;  %s30_s17 = sshll.u32 %s629_s1, 4  ;;  %s566_s18 = smov [#allocation6]   ;;  %s31_s17 = int_to_ptr.hbm [resolvable:$true] %s30_s17 }
   0x4   :  { %s32_s19 = sshll.u32 %s566_s18, 4  ;;  %s17_s22 = sshll.u32 %s628_s0, 4  ;;  %s33_s19 = int_to_ptr.vmem [resolvable:$true] %s32_s19  ;;  %s18_s22 = int_to_ptr.hbm [resolvable:$true] %s17_s22 }
   0x5   :  { %s567_s23 = smov 128   ;;  %s568_s24 = smov 8  }
   0x6   :  { %38 = dma.hbm_to_vmem [thread:$0]  %s31_s17, 2048, %s33_s19, [#allocation7], %s567_s23, %s567_s23, %s568_s24  }
   0x7   :  { %s569_s25 = smov [#allocation3]   ;;  %s43_s1 = sshll.u32 %s630_s2, 4  ;;  %s44_s1 = int_to_ptr.hbm [resolvable:$true] %s43_s1 }
   0x8   :  { %s19_s26 = sshll.u32 %s569_s25, 4  ;;  %s56_s30 = sshll.u32 %s631_s3, 4  ;;  %s20_s26 = int_to_ptr.vmem [resolvable:$true] %s19_s26  ;;  %s57_s30 = int_to_ptr.hbm [resolvable:$true] %s56_s30 }
   0x9   :  { %25 = dma.hbm_to_vmem [thread:$0]  %s18_s22, 2048, %s20_s26, [#allocation4], %s567_s23, %s567_s23, %s568_s24  }
   0xa   :  { %s570_s5 = smov [#allocation8]   ;;  %s571_s7 = smov [#allocation9]  }
   0xb   :  { %s45_s6 = sshll.u32 %s570_s5, 4  ;;  %s58_s2 = sshll.u32 %s571_s7, 4  ;;  %s46_s6 = int_to_ptr.vmem [resolvable:$true] %s45_s6  ;;  %s59_s2 = int_to_ptr.vmem [resolvable:$true] %s58_s2 }
   0xc   :  { %51 = dma.hbm_to_vmem [thread:$0]  %s44_s1, 2048, %s46_s6, [#allocation7], %s567_s23, %s567_s23, %s568_s24  }
   0xd   :  { %64 = dma.hbm_to_vmem [thread:$0]  %s57_s30, 2048, %s59_s2, [#allocation10], %s567_s23, %s567_s23, %s568_s24  }
   0xe   :  { %558 = dma.done.wait [#allocation4], 2048  }
   0xf   :  { %559 = vsyncadd [#allocation4], 4294965248 }
  0x10   :  { %560 = dma.done.wait [#allocation7], 4096  }
  0x11   :  { %561 = vsyncadd [#allocation7], 4294963200 }
  0x12   :  { %562 = dma.done.wait [#allocation10], 2048  }
  0x13   :  { %563 = vsyncadd [#allocation10], 4294965248  ;;  %v132_v0 = vld [vmem:[#allocation6 + $0x78] sm:$0xff]  ;;  %v131_v1 = vld [vmem:[#allocation6 + $0x70] sm:$0xff]  ;;  %s572_s3 = smov [#allocation11]   ;;  %s384_s11 = sshll.u32 %s632_s4, 4  ;;  %s385_s11 = int_to_ptr.hbm [resolvable:$true] %s384_s11 }
  0x14   :  { %399 = vmatpush.msra.mxu2 %v132_v0  ;;  %165 = vmatpush.msra.mxu0 %v132_v0  ;;  %v130_v2 = vld [vmem:[#allocation6 + $0x68] sm:$0xff]  ;;  %v129_v3 = vld [vmem:[#allocation6 + $0x60] sm:$0xff]  ;;  %v128_v4 = vld [vmem:[#allocation6 + $0x58] sm:$0xff]  ;;  %s382_s8 = sshll.u32 %s572_s3, 4  ;;  %s383_s8 = int_to_ptr.vmem [resolvable:$true] %s382_s8 }
  0x15   :  { %v127_v5 = vld [vmem:[#allocation6 + $0x50] sm:$0xff]  ;;  %v126_v6 = vld [vmem:[#allocation6 + $0x48] sm:$0xff]  ;;  %v125_v7 = vld [vmem:[#allocation6 + $0x40] sm:$0xff] }
  0x16   :  { %400 = vmatpush.msra.mxu2 %v131_v1  ;;  %166 = vmatpush.msra.mxu0 %v131_v1  ;;  %v124_v8 = vld [vmem:[#allocation6 + $0x38] sm:$0xff]  ;;  %v123_v9 = vld [vmem:[#allocation6 + $0x30] sm:$0xff]  ;;  %v122_v10 = vld [vmem:[#allocation6 + $0x28] sm:$0xff] }
  0x17   :  { %v121_v11 = vld [vmem:[#allocation6 + $0x20] sm:$0xff]  ;;  %v120_v12 = vld [vmem:[#allocation6 + $0x18] sm:$0xff]  ;;  %v119_v13 = vld [vmem:[#allocation6 + $0x10] sm:$0xff] }
  0x18   :  { %401 = vmatpush.msra.mxu2 %v130_v2  ;;  %167 = vmatpush.msra.mxu0 %v130_v2  ;;  %v118_v14 = vld [vmem:[#allocation6 + $0x8] sm:$0xff]  ;;  %v117_v15 = vld [vmem:[#allocation6] sm:$0xff]  ;;  %v111_v20 = vld [vmem:[#allocation3 + $0x50] sm:$0xff] }
  0x19   :  { %v109_v16 = vld [vmem:[#allocation3 + $0x40] sm:$0xff]  ;;  %v110_v18 = vld [vmem:[#allocation3 + $0x48] sm:$0xff]  ;;  %v103_v21 = vld [vmem:[#allocation3 + $0x10] sm:$0xff] }
  0x1a   :  { %402 = vmatpush.msra.mxu2 %v129_v3  ;;  %168 = vmatpush.msra.mxu0 %v129_v3  ;;  %v101_v17 = vld [vmem:[#allocation3] sm:$0xff]  ;;  %v102_v19 = vld [vmem:[#allocation3 + $0x8] sm:$0xff]  ;;  %v112_v22 = vld [vmem:[#allocation3 + $0x58] sm:$0xff] }
  0x1b   :  { %v104_v23 = vld [vmem:[#allocation3 + $0x18] sm:$0xff]  ;;  %v147_v25 = vld [vmem:[#allocation9 + $0x70] sm:$0xff]  ;;  %v146_v26 = vld [vmem:[#allocation9 + $0x68] sm:$0xff] }
  0x1c   :  { %403 = vmatpush.msra.mxu2 %v128_v4  ;;  %169 = vmatpush.msra.mxu0 %v128_v4  ;;  %v148_v24 = vld [vmem:[#allocation9 + $0x78] sm:$0xff]  ;;  %v145_v27 = vld [vmem:[#allocation9 + $0x60] sm:$0xff]  ;;  %v143_v31 = vld [vmem:[#allocation9 + $0x50] sm:$0xff] }
  0x1d   :  { %415 = vmatpush.msra.mxu3 %v148_v24  ;;  %246 = vmatpush.msra.mxu1 %v148_v24  ;;  %v113_v28 = vld [vmem:[#allocation3 + $0x60] sm:$0xff]  ;;  %v144_v30 = vld [vmem:[#allocation9 + $0x58] sm:$0xff]  ;;  %v142_v32 = vld [vmem:[#allocation9 + $0x48] sm:$0xff] }
  0x1e   :  { %404 = vmatpush.msra.mxu2 %v127_v5  ;;  %170 = vmatpush.msra.mxu0 %v127_v5  ;;  %v105_v29 = vld [vmem:[#allocation3 + $0x20] sm:$0xff]  ;;  %v114_v34 = vld [vmem:[#allocation3 + $0x68] sm:$0xff]  ;;  %v140_v36 = vld [vmem:[#allocation9 + $0x38] sm:$0xff] }
  0x1f   :  { %416 = vmatpush.msra.mxu3 %v147_v25  ;;  %247 = vmatpush.msra.mxu1 %v147_v25  ;;  %v141_v33 = vld [vmem:[#allocation9 + $0x40] sm:$0xff]  ;;  %v106_v35 = vld [vmem:[#allocation3 + $0x28] sm:$0xff]  ;;  %v139_v37 = vld [vmem:[#allocation9 + $0x30] sm:$0xff] }
  0x20   :  { %405 = vmatpush.msra.mxu2 %v126_v6  ;;  %171 = vmatpush.msra.mxu0 %v126_v6  ;;  %v138_v38 = vld [vmem:[#allocation9 + $0x28] sm:$0xff]  ;;  %v137_v39 = vld [vmem:[#allocation9 + $0x20] sm:$0xff]  ;;  %v115_v40 = vld [vmem:[#allocation3 + $0x70] sm:$0xff] }
  0x21   :  { %417 = vmatpush.msra.mxu3 %v146_v26  ;;  %248 = vmatpush.msra.mxu1 %v146_v26  ;;  %v107_v41 = vld [vmem:[#allocation3 + $0x30] sm:$0xff]  ;;  %v136_v42 = vld [vmem:[#allocation9 + $0x18] sm:$0xff]  ;;  %v134_v46 = vld [vmem:[#allocation9 + $0x8] sm:$0xff] }
  0x22   :  { %406 = vmatpush.msra.mxu2 %v125_v7  ;;  %172 = vmatpush.msra.mxu0 %v125_v7  ;;  %v135_v43 = vld [vmem:[#allocation9 + $0x10] sm:$0xff]  ;;  %v116_v44 = vld [vmem:[#allocation3 + $0x78] sm:$0xff]  ;;  %v133_v47 = vld [vmem:[#allocation9] sm:$0xff] }
  0x23   :  { %418 = vmatpush.msra.mxu3 %v145_v27  ;;  %249 = vmatpush.msra.mxu1 %v145_v27  ;;  %v108_v45 = vld [vmem:[#allocation3 + $0x38] sm:$0xff]  ;;  %v149_v48 = vld [vmem:[#allocation8] sm:$0xff]  ;;  %v150_v53 = vld [vmem:[#allocation8 + $0x8] sm:$0xff] }
  0x24   :  { %407 = vmatpush.msra.mxu2 %v124_v8  ;;  %173 = vmatpush.msra.mxu0 %v124_v8  ;;  %v157_v51 = vld [vmem:[#allocation8 + $0x40] sm:$0xff]  ;;  %v158_v57 = vld [vmem:[#allocation8 + $0x48] sm:$0xff]  ;;  %v151_v59 = vld [vmem:[#allocation8 + $0x10] sm:$0xff] }
  0x25   :  { %419 = vmatpush.msra.mxu3 %v144_v30  ;;  %250 = vmatpush.msra.mxu1 %v144_v30  ;;  %v159_v63 = vld [vmem:[#allocation8 + $0x50] sm:$0xff]  ;;  %v152_v1 = vld [vmem:[#allocation8 + $0x18] sm:$0xff]  ;;  %v153_v7 = vld [vmem:[#allocation8 + $0x20] sm:$0xff] }
  0x26   :  { %408 = vmatpush.msra.mxu2 %v123_v9  ;;  %174 = vmatpush.msra.mxu0 %v123_v9  ;;  %v160_v5 = vld [vmem:[#allocation8 + $0x58] sm:$0xff] }
  0x27   :  { %420 = vmatpush.msra.mxu3 %v143_v31  ;;  %251 = vmatpush.msra.mxu1 %v143_v31  ;;  %v156_v25 = vld [vmem:[#allocation8 + $0x38] sm:$0xff] }
  0x28   :  { %409 = vmatpush.msra.mxu2 %v122_v10  ;;  %175 = vmatpush.msra.mxu0 %v122_v10 }
  0x29   :  { %421 = vmatpush.msra.mxu3 %v142_v32  ;;  %252 = vmatpush.msra.mxu1 %v142_v32 }
  0x2a   :  { %410 = vmatpush.msra.mxu2 %v121_v11  ;;  %176 = vmatpush.msra.mxu0 %v121_v11  ;;  %v161_v11 = vld [vmem:[#allocation8 + $0x60] sm:$0xff] }
  0x2b   :  { %422 = vmatpush.msra.mxu3 %v141_v33  ;;  %253 = vmatpush.msra.mxu1 %v141_v33 }
  0x2c   :  { %411 = vmatpush.msra.mxu2 %v120_v12  ;;  %177 = vmatpush.msra.mxu0 %v120_v12 }
  0x2d   :  { %423 = vmatpush.msra.mxu3 %v140_v36  ;;  %254 = vmatpush.msra.mxu1 %v140_v36 }
  0x2e   :  { %412 = vmatpush.msra.mxu2 %v119_v13  ;;  %178 = vmatpush.msra.mxu0 %v119_v13  ;;  %v154_v13 = vld [vmem:[#allocation8 + $0x28] sm:$0xff] }
  0x2f   :  { %424 = vmatpush.msra.mxu3 %v139_v37  ;;  %255 = vmatpush.msra.mxu1 %v139_v37 }
  0x30   :  { %413 = vmatpush.msra.mxu2 %v118_v14  ;;  %179 = vmatpush.msra.mxu0 %v118_v14 }
  0x31   :  { %425 = vmatpush.msra.mxu3 %v138_v38  ;;  %256 = vmatpush.msra.mxu1 %v138_v38 }
  0x32   :  { %414 = vmatpush.msra.mxu2 %v117_v15  ;;  %180 = vmatpush.msra.mxu0 %v117_v15 }
  0x33   :  { %205 = vmatmul.f32.vlgmr.msra.gmra.mxu2 %v109_v16  ;;  %181 = vmatmul.f32.vlgmr.msra.gmra.mxu0 %v101_v17  ;;  %v162_v17 = vld [vmem:[#allocation8 + $0x68] sm:$0xff] }
  0x34   :  { %426 = vmatpush.msra.mxu3 %v137_v39  ;;  %257 = vmatpush.msra.mxu1 %v137_v39 }
  0x36   :  { %427 = vmatpush.msra.mxu3 %v136_v42  ;;  %258 = vmatpush.msra.mxu1 %v136_v42 }
  0x38   :  { %428 = vmatpush.msra.mxu3 %v135_v43  ;;  %259 = vmatpush.msra.mxu1 %v135_v43 }
  0x3a   :  { %429 = vmatpush.msra.mxu3 %v134_v46  ;;  %260 = vmatpush.msra.mxu1 %v134_v46 }
  0x3b   :  { %208 = vmatmul.f32.gmra.mxu2 %v110_v18  ;;  %184 = vmatmul.f32.gmra.mxu0 %v102_v19  ;;  %v155_v19 = vld [vmem:[#allocation8 + $0x30] sm:$0xff] }
  0x3c   :  { %430 = vmatpush.msra.mxu3 %v133_v47  ;;  %261 = vmatpush.msra.mxu1 %v133_v47 }
  0x43   :  { %211 = vmatmul.f32.gmra.mxu2 %v111_v20  ;;  %187 = vmatmul.f32.gmra.mxu0 %v103_v21 }
  0x4b   :  { %214 = vmatmul.f32.gmra.mxu2 %v112_v22  ;;  %190 = vmatmul.f32.gmra.mxu0 %v104_v23  ;;  %v163_v23 = vld [vmem:[#allocation8 + $0x70] sm:$0xff] }
  0x53   :  { %217 = vmatmul.f32.gmra.mxu2 %v113_v28  ;;  %193 = vmatmul.f32.gmra.mxu0 %v105_v29  ;;  %v164_v29 = vld [vmem:[#allocation8 + $0x78] sm:$0xff] }
  0x5b   :  { %220 = vmatmul.f32.gmra.mxu2 %v114_v34  ;;  %196 = vmatmul.f32.gmra.mxu0 %v106_v35 }
  0x63   :  { %223 = vmatmul.f32.gmra.mxu2 %v115_v40  ;;  %199 = vmatmul.f32.gmra.mxu0 %v107_v41 }
  0x6b   :  { %226 = vmatmul.f32.gmra.mxu2 %v116_v44  ;;  %202 = vmatmul.f32.gmra.mxu0 %v108_v45 }
  0xb0   :  { %v182_v49 = vpop.f32.mrf.mxu0 }
  0xb1   :  { %v183_v50 = vadd.f32 %v182_v49, %v149_v48 }
  0xb3   :  { %262 = vmatmul.f32.vlgmr.msra.gmra.mxu1 %v183_v50 }
  0xb6   :  { %v206_v52 = vpop.f32.mrf.mxu2 }
  0xb7   :  { %v207_v54 = vadd.f32 %v206_v52, %v157_v51 }
  0xb8   :  { %v185_v55 = vpop.f32.mrf.mxu0 }
  0xb9   :  { %286 = vmatmul.f32.vlgmr.msra.gmra.mxu3 %v207_v54  ;;  %v186_v56 = vadd.f32 %v185_v55, %v150_v53 }
  0xbb   :  { %265 = vmatmul.f32.gmra.mxu1 %v186_v56 }
  0xbe   :  { %v209_v58 = vpop.f32.mrf.mxu2 }
  0xbf   :  { %v210_v60 = vadd.f32 %v209_v58, %v158_v57 }
  0xc0   :  { %v188_v61 = vpop.f32.mrf.mxu0 }
  0xc1   :  { %289 = vmatmul.f32.gmra.mxu3 %v210_v60  ;;  %v189_v62 = vadd.f32 %v188_v61, %v151_v59 }
  0xc3   :  { %268 = vmatmul.f32.gmra.mxu1 %v189_v62 }
  0xc6   :  { %v212_v0 = vpop.f32.mrf.mxu2 }
  0xc7   :  { %v213_v2 = vadd.f32 %v212_v0, %v159_v63 }
  0xc8   :  { %v191_v3 = vpop.f32.mrf.mxu0 }
  0xc9   :  { %292 = vmatmul.f32.gmra.mxu3 %v213_v2  ;;  %v192_v4 = vadd.f32 %v191_v3, %v152_v1 }
  0xcb   :  { %271 = vmatmul.f32.gmra.mxu1 %v192_v4 }
  0xce   :  { %v215_v6 = vpop.f32.mrf.mxu2 }
  0xcf   :  { %v216_v8 = vadd.f32 %v215_v6, %v160_v5 }
  0xd0   :  { %v194_v9 = vpop.f32.mrf.mxu0 }
  0xd1   :  { %295 = vmatmul.f32.gmra.mxu3 %v216_v8  ;;  %v195_v10 = vadd.f32 %v194_v9, %v153_v7 }
  0xd3   :  { %274 = vmatmul.f32.gmra.mxu1 %v195_v10 }
  0xd6   :  { %v218_v12 = vpop.f32.mrf.mxu2 }
  0xd7   :  { %v219_v14 = vadd.f32 %v218_v12, %v161_v11 }
  0xd8   :  { %v197_v15 = vpop.f32.mrf.mxu0 }
  0xd9   :  { %298 = vmatmul.f32.gmra.mxu3 %v219_v14  ;;  %v198_v16 = vadd.f32 %v197_v15, %v154_v13 }
  0xdb   :  { %277 = vmatmul.f32.gmra.mxu1 %v198_v16 }
  0xde   :  { %v221_v18 = vpop.f32.mrf.mxu2 }
  0xdf   :  { %v222_v20 = vadd.f32 %v221_v18, %v162_v17 }
  0xe0   :  { %v200_v21 = vpop.f32.mrf.mxu0 }
  0xe1   :  { %301 = vmatmul.f32.gmra.mxu3 %v222_v20  ;;  %v201_v22 = vadd.f32 %v200_v21, %v155_v19 }
  0xe3   :  { %280 = vmatmul.f32.gmra.mxu1 %v201_v22 }
  0xe6   :  { %v224_v24 = vpop.f32.mrf.mxu2 }
  0xe7   :  { %v225_v26 = vadd.f32 %v224_v24, %v163_v23 }
  0xe8   :  { %v203_v27 = vpop.f32.mrf.mxu0 }
  0xe9   :  { %304 = vmatmul.f32.gmra.mxu3 %v225_v26  ;;  %v204_v28 = vadd.f32 %v203_v27, %v156_v25 }
  0xeb   :  { %283 = vmatmul.f32.gmra.mxu1 %v204_v28 }
  0xee   :  { %v227_v30 = vpop.f32.mrf.mxu2 }
  0xef   :  { %v228_v31 = vadd.f32 %v227_v30, %v164_v29 }
  0xf1   :  { %307 = vmatmul.f32.gmra.mxu3 %v228_v31 }
 0x130   :  { %v263_v32 = vpop.f32.mrf.mxu1 }
 0x131   :  { %362 = vst [vmem:[#allocation11] sm:$0xff] %v263_v32 }
 0x138   :  { %v266_v33 = vpop.f32.mrf.mxu1 }
 0x139   :  { %363 = vst [vmem:[#allocation11 + $0x8] sm:$0xff] %v266_v33 }
 0x13c   :  { %v287_v34 = vpop.f32.mrf.mxu3 }
 0x13d   :  { %370 = vst [vmem:[#allocation11 + $0x40] sm:$0xff] %v287_v34 }
 0x140   :  { %v269_v35 = vpop.f32.mrf.mxu1 }
 0x141   :  { %364 = vst [vmem:[#allocation11 + $0x10] sm:$0xff] %v269_v35 }
 0x144   :  { %v290_v36 = vpop.f32.mrf.mxu3 }
 0x145   :  { %371 = vst [vmem:[#allocation11 + $0x48] sm:$0xff] %v290_v36 }
 0x148   :  { %v272_v37 = vpop.f32.mrf.mxu1 }
 0x149   :  { %365 = vst [vmem:[#allocation11 + $0x18] sm:$0xff] %v272_v37 }
 0x14c   :  { %v293_v38 = vpop.f32.mrf.mxu3 }
 0x14d   :  { %372 = vst [vmem:[#allocation11 + $0x50] sm:$0xff] %v293_v38 }
 0x150   :  { %v275_v39 = vpop.f32.mrf.mxu1 }
 0x151   :  { %366 = vst [vmem:[#allocation11 + $0x20] sm:$0xff] %v275_v39 }
 0x154   :  { %v296_v40 = vpop.f32.mrf.mxu3 }
 0x155   :  { %373 = vst [vmem:[#allocation11 + $0x58] sm:$0xff] %v296_v40 }
 0x158   :  { %v278_v41 = vpop.f32.mrf.mxu1 }
 0x159   :  { %367 = vst [vmem:[#allocation11 + $0x28] sm:$0xff] %v278_v41 }
 0x15c   :  { %v299_v42 = vpop.f32.mrf.mxu3 }
 0x15d   :  { %374 = vst [vmem:[#allocation11 + $0x60] sm:$0xff] %v299_v42 }
 0x160   :  { %v281_v43 = vpop.f32.mrf.mxu1 }
 0x161   :  { %368 = vst [vmem:[#allocation11 + $0x30] sm:$0xff] %v281_v43 }
 0x164   :  { %v302_v44 = vpop.f32.mrf.mxu3 }
 0x165   :  { %375 = vst [vmem:[#allocation11 + $0x68] sm:$0xff] %v302_v44 }
 0x168   :  { %v284_v45 = vpop.f32.mrf.mxu1 }
 0x169   :  { %369 = vst [vmem:[#allocation11 + $0x38] sm:$0xff] %v284_v45 }
 0x16c   :  { %v305_v46 = vpop.f32.mrf.mxu3 }
 0x16d   :  { %376 = vst [vmem:[#allocation11 + $0x70] sm:$0xff] %v305_v46 }
 0x174   :  { %v308_v47 = vpop.f32.mrf.mxu3 }
 0x175   :  { %377 = vst [vmem:[#allocation11 + $0x78] sm:$0xff] %v308_v47 }
 0x176   :  { %390 = dma.vmem_to_hbm [thread:$0]  %s383_s8, 2048, %s385_s11, [#allocation5], %s567_s23, %s567_s23, %s568_s24  }
 0x177   :  { %564 = dma.done.wait [#allocation5], 2048  }
 0x178   :  { %565 = vsyncadd [#allocation5], 4294965248 }
 0x179   :  { %395 = vsyncpa [#allocation4], 1 }
 0x17a   :  { %396 = vsyncpa [#allocation7], 1 }
 0x17b   :  { %397 = vsyncpa [#allocation10], 1 }
 0x17c   :  { %398 = vsyncpa [#allocation5], 1 }

</bundles_post_ra>
